<compile_context>
chip_gen: v6e
topology: v6e:2x2x1
jax: 0.10.0
libtpu: 0.0.40
codegen_flags: <defaults>
</compile_context>

<pallas_src>
import jax
import jax.numpy as jnp
from jax import lax
from jax.experimental import pallas as pl
from jax.experimental.pallas import tpu as pltpu

EPS = 1e-20


def _vector_gumbel_mbv_kernel(x_ref, n_ref, w_ref, b_ref, o_ref):
    # x_ref: (1, E, S) f32   one batch element, NCW layout (no wrapper transpose)
    # n_ref: (1, S, E) f32   logistic noise  = g0 - g1 (difference of two Gumbels)
    # w_ref: (E, E)    bf16  difference weight (w0 - w1), laid out (in, out)
    # b_ref: (1, E)    f32   difference bias
    # o_ref: (1, S, E) f32
    x = x_ref[0].astype(jnp.bfloat16)                     # (E, S), bf16 for the MXU
    # Contract the E (sublane) axis of the NCW tile directly: (E,S)^T @ (E,E) -> (S,E)
    z = lax.dot_general(
        x, w_ref[...],
        dimension_numbers=(((0,), (0,)), ((), ())),
        preferred_element_type=jnp.float32,
    )
    y = z + b_ref[...] + n_ref[0]
    # Straight-through forward value is the hard one-hot; the soft gumbel-softmax
    # path ((y_hard - y_soft) + y_soft == y_hard exactly) is dead compute here.
    # TODO(synk): gradients (STE soft path) would need a custom_vjp backward kernel.
    o_ref[0] = (y >= 0.0).astype(jnp.float32)


def vector_gumbel_mbv(x_ncw, weight, bias, key):
    """VectorGumbel(mode='mbv').forward.

    x_ncw : (B, E, S) float32  -- PyTorch NCW layout (batch, channels=E, seq)
    weight: (2E, E)   float32  -- torch nn.Linear(E, 2E) weight (out, in)
    bias  : (2E,)     float32
    key   : jax PRNG key for the Gumbel noise
    returns (B, S, E) float32  -- hard 0/1 selection of pair-index 0
    """
    B, E, S = x_ncw.shape

    # Forward only needs sign(z0 - z1 + (g0 - g1)): fold Linear(E, 2E) into a
    # single difference weight/bias (halves MXU flops and weight VMEM).
    w_diff = jnp.transpose(weight[0::2, :] - weight[1::2, :]).astype(jnp.bfloat16)  # (E, E)
    b_diff = (bias[0::2] - bias[1::2]).reshape(1, E).astype(jnp.float32)             # (1, E)

    # Gumbel-difference (logistic) noise, generated wrapper-side with jax.random.
    # TODO(synk): could use the in-kernel TPU hardware PRNG (pltpu.prng_*) on real
    # chips, but it has no interpret-mode lowering, so noise is passed in instead.
    k0, k1 = jax.random.split(key)
    u0 = jax.random.uniform(k0, (B, S, E), jnp.float32)
    u1 = jax.random.uniform(k1, (B, S, E), jnp.float32)
    g0 = -jnp.log(-jnp.log(u0 + EPS) + EPS)
    g1 = -jnp.log(-jnp.log(u1 + EPS) + EPS)
    noise = g0 - g1

    x_ncw = x_ncw.astype(jnp.float32)

    return pl.pallas_call(
        _vector_gumbel_mbv_kernel,
        out_shape=jax.ShapeDtypeStruct((B, S, E), jnp.float32),
        grid=(B,),
        in_specs=[
            pl.BlockSpec((1, E, S), lambda b: (b, 0, 0)),   # x, NCW block
            pl.BlockSpec((1, S, E), lambda b: (b, 0, 0)),   # logistic noise
            pl.BlockSpec((E, E), lambda b: (0, 0)),         # difference weight (resident)
            pl.BlockSpec((1, E), lambda b: (0, 0)),         # difference bias (resident)
        ],
        out_specs=pl.BlockSpec((1, S, E), lambda b: (b, 0, 0)),
        compiler_params=pltpu.CompilerParams(
            dimension_semantics=("parallel",),               # shard batch across v7x TCs
        ),
    )(x_ncw, noise, w_diff, b_diff)


if __name__ == "__main__":
    B, E, S = 2, 32, 8  # batch, embedding_dim, sequence length

    key = jax.random.PRNGKey(0)
    kx, kw, kb, kn = jax.random.split(key, 4)

    # deterministic synthetic params, matching torch.nn.Linear(E, 2E) init range
    bound = 1.0 / (E ** 0.5)
    weight = jax.random.uniform(kw, (2 * E, E), jnp.float32, -bound, bound)
    bias = jax.random.uniform(kb, (2 * E,), jnp.float32, -bound, bound)

    x = jax.random.normal(kx, (B, E, S), jnp.float32)  # PyTorch NCW input

    out = vector_gumbel_mbv(x, weight, bias, kn)
    out = jax.block_until_ready(out)

    assert out.shape == (B, S, E), out.shape
    # forward value of the straight-through gumbel softmax is a hard 0/1 selection
    assert bool(jnp.all((out == 0.0) | (out == 1.0)))

    print("KERNEL_OK")
</pallas_src>

<mosaic_0001>
module attributes {stable_mosaic.version = 11 : i64} {
  func.func @_vector_gumbel_mbv_kernel(%arg0: i32, %arg1: memref<1x32x8xf32, #tpu.memory_space<vmem>>, %arg2: memref<1x8x32xf32, #tpu.memory_space<vmem>>, %arg3: memref<32x32xbf16, #tpu.memory_space<vmem>>, %arg4: memref<1x32xf32, #tpu.memory_space<vmem>>, %arg5: memref<1x8x32xf32, #tpu.memory_space<vmem>>) attributes {dimension_semantics = [#tpu.dimension_semantics<parallel>], iteration_bounds = array<i64: 2>, scalar_prefetch = 0 : i64, scratch_operands = 0 : i64, tpu.core_type = #tpu.core_type<tc>, window_params = [{transform_indices = @transform_0, window_bounds = array<i64: 1, 32, 8>}, {transform_indices = @transform_1, window_bounds = array<i64: 1, 8, 32>}, {pipeline_mode = #tpu.pipeline_mode<synchronous>, transform_indices = @transform_2, window_bounds = array<i64: 32, 32>}, {pipeline_mode = #tpu.pipeline_mode<synchronous>, transform_indices = @transform_3, window_bounds = array<i64: 1, 32>}, {transform_indices = @transform_4, window_bounds = array<i64: 1, 8, 32>}]} {
    %c0 = arith.constant 0 : index
    %c0_0 = arith.constant 0 : index
    %c0_1 = arith.constant 0 : index
    %0 = vector.load %arg1[%c0, %c0_0, %c0_1] : memref<1x32x8xf32, #tpu.memory_space<vmem>>, vector<1x32x8xf32>
    %1 = vector.shape_cast %0 : vector<1x32x8xf32> to vector<32x8xf32>
    %2 = arith.truncf %1 : vector<32x8xf32> to vector<32x8xbf16>
    %c0_2 = arith.constant 0 : index
    %c0_3 = arith.constant 0 : index
    %3 = vector.load %arg3[%c0_2, %c0_3] : memref<32x32xbf16, #tpu.memory_space<vmem>>, vector<32x32xbf16>
    %cst = arith.constant dense<0.000000e+00> : vector<8x32xf32>
    %4 = tpu.matmul %2, %3, %cst {dimension_numbers = #tpu.dot_dimension_numbers<[0], [0], [1], [1], [0, 1, 1, 1], [], []>} : vector<32x8xbf16>, vector<32x32xbf16>, vector<8x32xf32> -> vector<8x32xf32>
    %c0_4 = arith.constant 0 : index
    %c0_5 = arith.constant 0 : index
    %5 = vector.load %arg4[%c0_4, %c0_5] : memref<1x32xf32, #tpu.memory_space<vmem>>, vector<1x32xf32>
    %6 = vector.broadcast %5 : vector<1x32xf32> to vector<8x32xf32>
    %7 = arith.addf %4, %6 : vector<8x32xf32>
    %c0_6 = arith.constant 0 : index
    %c0_7 = arith.constant 0 : index
    %c0_8 = arith.constant 0 : index
    %8 = vector.load %arg2[%c0_6, %c0_7, %c0_8] : memref<1x8x32xf32, #tpu.memory_space<vmem>>, vector<1x8x32xf32>
    %9 = vector.shape_cast %8 : vector<1x8x32xf32> to vector<8x32xf32>
    %10 = arith.addf %7, %9 : vector<8x32xf32>
    %cst_9 = arith.constant 0.000000e+00 : f32
    %11 = vector.broadcast %cst_9 : f32 to vector<8x32xf32>
    %12 = arith.cmpf oge, %10, %11 : vector<8x32xf32>
    %13 = arith.extui %12 : vector<8x32xi1> to vector<8x32xi32>
    %14 = arith.sitofp %13 : vector<8x32xi32> to vector<8x32xf32>
    %c0_10 = arith.constant 0 : index
    %c0_11 = arith.constant 0 : index
    %c0_12 = arith.constant 0 : index
    %15 = vector.load %arg5[%c0_10, %c0_11, %c0_12] : memref<1x8x32xf32, #tpu.memory_space<vmem>>, vector<1x8x32xf32>
    %16 = vector.shape_cast %15 : vector<1x8x32xf32> to vector<8x32xf32>
    %17 = vector.shape_cast %14 : vector<8x32xf32> to vector<1x8x32xf32>
    tpu.vector_store %arg5[%c0_10, %c0_11, %c0_12], %17 {strides = array<i32>} : memref<1x8x32xf32, #tpu.memory_space<vmem>>, vector<1x8x32xf32>,
    return
  }
  func.func @transform_0(%arg0: i32) -> (i32, i32, i32) {
    %c0_i32 = arith.constant 0 : i32
    %c0_i32_0 = arith.constant 0 : i32
    %c0_i32_1 = arith.constant 0 : i32
    return %arg0, %c0_i32, %c0_i32_0 : i32, i32, i32
  }
  func.func @transform_1(%arg0: i32) -> (i32, i32, i32) {
    %c0_i32 = arith.constant 0 : i32
    %c0_i32_0 = arith.constant 0 : i32
    %c0_i32_1 = arith.constant 0 : i32
    return %arg0, %c0_i32, %c0_i32_0 : i32, i32, i32
  }
  func.func @transform_2(%arg0: i32) -> (i32, i32) {
    %c0_i32 = arith.constant 0 : i32
    %c0_i32_0 = arith.constant 0 : i32
    %c0_i32_1 = arith.constant 0 : i32
    return %c0_i32, %c0_i32_0 : i32, i32
  }
  func.func @transform_3(%arg0: i32) -> (i32, i32) {
    %c0_i32 = arith.constant 0 : i32
    %c0_i32_0 = arith.constant 0 : i32
    %c0_i32_1 = arith.constant 0 : i32
    return %c0_i32, %c0_i32_0 : i32, i32
  }
  func.func @transform_4(%arg0: i32) -> (i32, i32, i32) {
    %c0_i32 = arith.constant 0 : i32
    %c0_i32_0 = arith.constant 0 : i32
    %c0_i32_1 = arith.constant 0 : i32
    return %arg0, %c0_i32, %c0_i32_0 : i32, i32, i32
  }
}

</mosaic_0001>

<bundles_post_ra>
// kernel: tpu_custom_call.1
= control target key start
LH: loop header
LB: loop body
LE: loop exit
PB: predicated region body
PF: predicated region fallthrough
CT: control target
= control target key end

     0   :  { %9 = vsyncpa [#allocation3], 0  ;;  %s670_s0 = inlined_call_operand.vmem [shape: f32[2,32,8], index: 0, kind: input, shape index: {}]   ;;  %s671_s1 = inlined_call_operand.vmem [shape: f32[2,8,32], index: 1, kind: input, shape index: {}]   ;;  %s672_s2 = inlined_call_operand.vmem [shape: bf16[32,32], index: 2, kind: input, shape index: {}]   ;;  %s673_s3 = inlined_call_operand.vmem [shape: f32[1,32], index: 3, kind: input, shape index: {}]   ;;  %s674_s4 = inlined_call_operand.hbm [shape: f32[2,8,32], index: 4, kind: output, shape index: {}]  }
   0x1   :  { %11 = vsyncpa [#allocation3 + $0x1], 0  ;;  %s557_s15 = smov 0   ;;  %s559_s16 = smov 0  }
   0x2   :  { %s561_s17 = smov 0   ;;  %s563_s18 = smov 0  }
   0x3 LB: > { %s578_s19 = sadd.s32 4294967295, %s527_s18   ;;  %s394_s20 = sadd.s32 4294967294, %s527_s18   ;;  %s527_s18 = sphi %s563_s18, %s680_s18   ;;  %s523_s17 = sphi %s561_s17, %s679_s17   ;;  %s519_s16 = sphi %s559_s16, %s678_s16   ;;  %s515_s15 = sphi %s557_s15, %s677_s15  }
   0x4   : > { %s582_s21 = sadd.s32 1, %s527_s18   ;;  %s118_s22 = sadd.s32 1, %s523_s17 }
   0x5   : > { %s115_s23 = ssub.s32 %s527_s18, %s582_s21  ;;  %p128_p0 = scmp.ne.s32.totalorder %s523_s17, %s519_s16 }
   0x6   : > { %p116_p1 = scmp.eq.s32.totalorder %s115_s23, 0  ;;  %p129_p2 = scmp.eq.s32.totalorder %s578_s19, 1 }
   0x7   : > { %p134_p3 = scmp.ne.s32.totalorder %s519_s16, %s515_s15  ;;  %p135_p4 = scmp.eq.s32.totalorder %s394_s20, 1 }
   0x8   : > { %s593_s24 = scalar_select %p116_p1, %s523_s17, %s118_s22  }
   0x9   : > { %p595_p5 = por %p129_p2, %p128_p0  ;;  %p599_p6 = por %p135_p4, %p134_p3 }
   0xa   : > { %p397_p7 = scmp.ge.s32.totalorder %s527_s18, 1  ;;  %p174_p8 = scmp.lt.s32.totalorder %s527_s18, 3 }
   0xc   : > { %p175_p9 = pnand %p397_p7, %p174_p8 }
   0xd   : > { %p204_p10 = scmp.lt.s32.totalorder (!%p175_p9), %s578_s19, 1  ;;  %s201_s10 = sand.u32 (!%p175_p9), 1, %s519_s16  }
   0xe   : > { %178 = sbr.rel (%p175_p9) target bundleno = 337 (0x151), region = 36  ;;  %s398_s12 = sshll.u32 (!%p175_p9), %s201_s10, 3 }
   0xf   : > { %s408_s27 = sshll.u32 (!%p175_p9), %s578_s19, 7  ;;  %s203_s28 = scalar_lea.vmem (!%p175_p9), [#allocation2], %s398_s12 }
  0x10   : > { %s323_s30 = sshll.u32 (!%p175_p9), %s203_s28, 4  ;;  %s531_s8 = smov (!%p175_p9), [#allocation2]   ;;  %s630_s30 = int_to_ptr.vmem [resolvable:$true] %s323_s30 }
  0x11   : > { %s467_s7 = scalar_lea.vmem (!%p175_p9), %s630_s30, 128 }
  0x12   : > { %p468_p11 = scmp.ne.s32.totalorder (!%p175_p9), %s630_s30, %s467_s7 }
  0x13   : > { %v465_v0 = vld [vmem:[%s672_s2 + $0x8] sm:$0xff]   ;;  %v529_v1 = vmov 0.0   ;;  %s205_s29 = scalar_select %p204_p10, %s578_s19, 1  ;;  %v466_v2 = vld [vmem:[%s672_s2] sm:$0xff]   ;;  %vm530_vm0 = vmmov 0   ;;  %vm259_vm1 = vcmask 261120  }
  0x14   : > { %415 = vmatprep.subr.bf16.mxu0 %v529_v1  ;;  %419 = vmatprep.mubr.msk.bf16.mxu0 %vm530_vm0, %v529_v1  ;;  %v402_v10 = vld [vmem:[%s673_s3] ss:$0 sm:$0xff]  ;;  %s310_s19 = scalar_lea.sflag [#allocation3], %s201_s10  ;;  %p469_p12 = pnand %p468_p11, %p595_p5 }
  0x15   : > { %416 = vmatpush3.bf16.msra.mxu0 %v465_v0  ;;  %s411_s6 = sshll.u32 %s205_s29, 5  ;;  %s401_s11 = sshll.u32 %s205_s29, 3 }
  0x16   : > { %417 = vmatprep.subr.bf16.mxu0 %v529_v1  ;;  %s208_s9 = scalar_lea.vmem %s670_s0, %s411_s6  ;;  %s212_s20 = scalar_lea.vmem %s671_s1, %s401_s11 }
  0x17   : > { %v214_v3 = vld [vmem:[%s208_s9] sm:$0xff]  ;;  %v215_v4 = vld [vmem:[%s208_s9 + $0x8] sm:$0xff]  ;;  %v216_v5 = vld [vmem:[%s208_s9 + $0x10] sm:$0xff]  ;;  %s628_s6 = scalar_lea.hbm %s674_s4, %s408_s27  ;;  %p470_p13 = pneg %p469_p12 }
  0x18   : > { %v218_v6 = vpack.c.bf16 %v215_v4, %v214_v3  ;;  %v217_v7 = vld [vmem:[%s208_s9 + $0x18] sm:$0xff]  ;;  %v303_v12 = vld [vmem:[%s212_s20] sm:$0xff]  ;;  %s471_s9 = sshll.u32 %s531_s8, 4  ;;  %s472_s9 = int_to_ptr.vmem [resolvable:$false] %s471_s9 }
  0x19   : > { %418 = vmatpush3.bf16.msra.mxu0 %v466_v2  ;;  %v219_v8 = vpack.c.bf16 %v217_v7, %v216_v5  ;;  %s473_s11 = scalar_lea.vmem %s472_s9, 256  ;;  %p474_p0 = scmp.lt.s32.totalorder %s630_s30, %s472_s9 }
  0x1a   : > { %231 = vxpose.xlu0.c.b16.start [1/2] (short) (narrow) %v218_v6, 16  ;;  %p475_p1 = scmp.lt.s32.totalorder %s473_s11, %s467_s7 }
  0x1c   : > { %p476_p2 = por %p475_p1, %p474_p0 }
  0x1e   : > { %232 = vxpose.xlu0.c.b16.end [2/2] (short) (narrow) %v219_v8, 16  ;;  %p477_p3 = pnand %p476_p2, %p470_p13 }
  0x7c   : > { %v239_v9 = vpop.trf.xlu0 }
  0x7d   : > { %420 = vmatmul.mubr.msk.bf16.vlgmr.msra.gmra.mxu0 %vm259_vm1, %v239_v9 }
 0x13d   : > { %v297_v11 = vpop.f32.mrf.mxu0 }
 0x13e   : > { %v298_v13 = vadd.f32 %v402_v10, %v297_v11 }
 0x13f   : > { %v421_v14 = vpop.f32.mrf.mxu0 }
 0x140   : > { %v304_v15 = vadd.f32 %v303_v12, %v298_v13 }
 0x141   : > { %v300_v16 = vpop.f32.mrf.mxu0 }
 0x142   : > { %vm305_vm2 = vcmp.ge.f32.partialorder %v304_v15, 0.0 }
 0x143   : > { %v406_v17 = vsel %vm305_vm2, 1.0, %v529_v1  ;;  %v422_v18 = vpop.f32.mrf.mxu0 }
 0x144   : > { %308 = vst.msk [vmem:[%s203_s28] sm:$0xff] %vm259_vm1, %v406_v17 }
 0x145   : > { %480 = shalt.err (!%p477_p3)
}
 0x146   : > { %s481_s12 = scalar_lea.hbm %s628_s6, 128  ;;  %s485_s14 = scalar_lea.hbm %s674_s4, 256 }
 0x147   : > { %p482_p4 = scmp.ne.s32.totalorder %s628_s6, %s481_s12  ;;  %p486_p9 = scmp.lt.s32.totalorder %s628_s6, %s674_s4 }
 0x148   : > { %p487_p10 = scmp.lt.s32.totalorder %s485_s14, %s481_s12 }
 0x149   : > { %p483_p7 = pnand %p482_p4, %p595_p5 }
 0x14a   : > { %p488_p11 = por %p487_p10, %p486_p9 }
 0x14b   : > { %p484_p8 = pneg %p483_p7 }
 0x14d   : > { %p489_p12 = pnand %p488_p11, %p484_p8 }
 0x14f   : > { %492 = shalt.err (!%p489_p12)
}
 0x150   : > { %423 = dma.vmem_to_hbm [thread:$0]  (%p595_p5), %s630_s30, 128, %s628_s6, %s310_s19  }
 0x151 PF: > { %p429_p13 = scmp.ge.s32.totalorder %s527_s18, 2  ;;  %s335_s23 = sand.u32 1, %s515_s15  }
 0x152   : > { %s336_s27 = scalar_lea.sflag [#allocation3], %s335_s23 }
 0x153   : > { %p426_p0 = pnand %p429_p13, %p599_p6 }
 0x155   : > { %p427_p1 = pneg %p426_p0 }
 0x157   : > { %510 = dma.done.wait (%p427_p1), %s336_s27, 128  }
 0x158   : > { %512 = vsyncadd (%p427_p1), %s336_s27, 4294967168  ;;  %p14_p2 = scmp.ge.s32.totalorder %s582_s21, 4   ;;  %s677_s15 = smov %s519_s16 }
 0x159   : > { %s678_s16 = smov %s523_s17  ;;  %s679_s17 = smov %s593_s24 }
 0x15a   : > { %s680_s18 = smov %s582_s21  ;;  %16 = sbr.rel (!%p14_p2) target bundleno = 3 (0x3), region = 74 }
 0x15f   :  { %341 = vsyncpa [#allocation3], 1 }
 0x160   :  { %343 = vsyncpa [#allocation3 + $0x1], 1 }

</bundles_post_ra>
